<compile_context>
chip_gen: v7x
topology: tpu7x:2x2x1
jax: 0.10.0
libtpu: 0.0.40
codegen_flags: <defaults>
</compile_context>

<pallas_src>
import jax
import jax.numpy as jnp
from jax.experimental import pallas as pl
from jax.experimental.pallas import tpu as pltpu


_FUSE_GATHER_MAX_VOCAB = 1024   # one-hot-matmul gather only below this


# ---------------------------------------------------------------------------
# Kernel helpers
# ---------------------------------------------------------------------------
def _gate_math(gates, c_prev, H):
    """Gate nonlinearities + cell update.

    One contiguous sigmoid over the i/f/o gates, one tanh over the g gate.
    Rows past the true M in the last (padded) grid block compute on garbage
    but are dropped by the masked output store, so this is safe."""
    sig = jax.nn.sigmoid(gates[:, : 3 * H])
    i_t = sig[:, 0 * H:1 * H]
    f_t = sig[:, 1 * H:2 * H]
    o_t = sig[:, 2 * H:3 * H]
    g_t = jnp.tanh(gates[:, 3 * H:])
    c_t = f_t * c_prev + i_t * g_t
    h_t = o_t * jnp.tanh(c_t)
    return h_t, c_t


def _emit(h_t, c_t, h_ref, c_ref):
    h_ref[...] = h_t.astype(h_ref.dtype)   # bf16: h feeds matmuls downstream
    c_ref[...] = c_t.astype(c_ref.dtype)   # f32 : keep cell-state precision


def _onehot_gather(ids_ref, emb_ref):
    """Small-vocab embedding gather as a one-hot MXU matmul.

    Exact row selection (1.0 * row), lowers cleanly on Mosaic, and the MXU is
    idle-rich in this HBM-bound kernel.  Garbage ids in padded rows simply
    produce an all-zero row (no OOB hazard).
    TODO(synk): for vocab > _FUSE_GATHER_MAX_VOCAB switch to a scalar-prefetch
    + manual-DMA row gather instead of the XLA-gather fallback."""
    tm = ids_ref.shape[0]
    V = emb_ref.shape[0]
    onehot = (ids_ref[...] ==
              jax.lax.broadcasted_iota(jnp.int32, (tm, V), 1)).astype(emb_ref.dtype)
    x = jnp.dot(onehot, emb_ref[...], preferred_element_type=jnp.float32)
    return x.astype(emb_ref.dtype)          # exact: one-hot selects bf16 rows


# ---------------------------------------------------------------------------
# Kernels
# ---------------------------------------------------------------------------
def _lstm_bcast_ids_kernel(ids_ref, emb_ref, wx_ref, beff_ref, c0_ref, h_ref, c_ref):
    """Broadcast (1,1,H) hidden state + fused gather.  h0@Wh + bx + bh is
    pre-folded into the effective bias, so per tile it is one gather matmul
    plus one (TM,H)@(H,4H) MXU matmul; only token ids are streamed."""
    H = h_ref.shape[1]
    x = _onehot_gather(ids_ref, emb_ref)
    gates = jnp.dot(x, wx_ref[...], preferred_element_type=jnp.float32) + beff_ref[...]
    _emit(*_gate_math(gates, c0_ref[...], H), h_ref, c_ref)


def _lstm_bcast_x_kernel(x_ref, wx_ref, beff_ref, c0_ref, h_ref, c_ref):
    """Broadcast hidden state; pre-gathered bf16 x streamed (large-vocab fallback)."""
    H = h_ref.shape[1]
    gates = jnp.dot(x_ref[...], wx_ref[...],
                    preferred_element_type=jnp.float32) + beff_ref[...]
    _emit(*_gate_math(gates, c0_ref[...], H), h_ref, c_ref)


def _lstm_full_ids_kernel(ids_ref, hin_ref, cin_ref, emb_ref, wx_ref, wh_ref, b_ref,
                          h_ref, c_ref):
    """Per-row hidden state + fused gather: two accumulated MXU dots against
    resident Wx / Wh slabs (no in-kernel concat)."""
    H = h_ref.shape[1]
    x = _onehot_gather(ids_ref, emb_ref)
    gates = (jnp.dot(x, wx_ref[...], preferred_element_type=jnp.float32)
             + jnp.dot(hin_ref[...], wh_ref[...], preferred_element_type=jnp.float32)
             + b_ref[...])
    _emit(*_gate_math(gates, cin_ref[...], H), h_ref, c_ref)


def _lstm_full_x_kernel(x_ref, hin_ref, cin_ref, wx_ref, wh_ref, b_ref, h_ref, c_ref):
    """Per-row hidden state; pre-gathered bf16 x streamed (large-vocab fallback)."""
    H = h_ref.shape[1]
    gates = (jnp.dot(x_ref[...], wx_ref[...], preferred_element_type=jnp.float32)
             + jnp.dot(hin_ref[...], wh_ref[...], preferred_element_type=jnp.float32)
             + b_ref[...])
    _emit(*_gate_math(gates, cin_ref[...], H), h_ref, c_ref)


# ---------------------------------------------------------------------------
# Tiling + pallas_call wrapper
# ---------------------------------------------------------------------------
def _round_up(n, m):
    return -(-n // m) * m


def _choose_tm(M, H):
    """Row-tile size.  HBM-bound kernel => biggest tile wins (amortizes the
    ~0.35us/step overhead, approaches the DMA roofline).  The binding
    constraint is grid count -- keep >= ~4 steps so the 1-D 'parallel' grid
    shards across v7x's two TensorCores and still double-buffers -- not VMEM,
    which only matters at very large H.  TM is a multiple of 16 so bf16
    streams stay sublane-aligned."""
    if M <= 16:
        return M                                    # one full-array block
    tm = min(2048, _round_up(pl.cdiv(M, 4), 16))
    # VMEM guard (binds only for H >~ 512): keep the per-tile f32 working set
    # (gates, temporaries, double-buffered streams) around ~24 MiB.
    tm = min(tm, _round_up(max(256, (24 << 20) // (64 * H)), 16))
    return tm


def _vmem_limit_bytes(TM, H, streamed, resident):
    res = sum(int(a.size) * a.dtype.itemsize for a in resident)
    row = sum((int(a.size) // a.shape[0]) * a.dtype.itemsize for a in streamed)
    row += 2 * H + 4 * H                     # bf16 h_t + f32 c_t outputs
    live = TM * (4 * H) * 4 * 2              # f32 gates + elementwise temps
    need = res + 2 * TM * row + live         # x2 on row streams: double buffer
    return int(min(max(2 * need, 8 << 20), 56 << 20))


def _run_lstm(kernel, streamed, resident, M, H):
    """Common pallas_call wrapper: row-streamed inputs + VMEM-resident params,
    1-D parallel grid over M = B*T, outputs h_t (bf16) and c_t (f32)."""
    TM = _choose_tm(M, H)
    grid = (pl.cdiv(M, TM),)

    def stream_spec(a):
        tail = (0,) * (a.ndim - 1)
        return pl.BlockSpec((TM,) + a.shape[1:], lambda i: (i,) + tail)

    def resident_spec(a):
        zero = (0,) * a.ndim
        return pl.BlockSpec(a.shape, lambda i: zero)

    row_out = pl.BlockSpec((TM, H), lambda i: (i, 0))
    # TODO(synk): on v7x, sweep pipeline_mode=pl.Buffered(3) on the streamed
    # specs if profiling shows exposed DMA on short grids.
    return pl.pallas_call(
        kernel,
        out_shape=(jax.ShapeDtypeStruct((M, H), jnp.bfloat16),   # h_t
                   jax.ShapeDtypeStruct((M, H), jnp.float32)),   # c_t
        grid_spec=pltpu.PrefetchScalarGridSpec(
            num_scalar_prefetch=0,
            grid=grid,
            in_specs=[stream_spec(a) for a in streamed]
                     + [resident_spec(a) for a in resident],
            out_specs=(row_out, row_out),
        ),
        compiler_params=pltpu.CompilerParams(
            dimension_semantics=("parallel",),
            vmem_limit_bytes=_vmem_limit_bytes(TM, H, streamed, resident),
        ),
    )(*streamed, *resident)


# ---------------------------------------------------------------------------
# Module
# ---------------------------------------------------------------------------
class SeqEncoderPallas:
    """JAX/Pallas port of SeqEncoder (Embedding + SimpleLSTM cell)."""

    def __init__(self, input_size, hidden_size, key):
        self.hidden_size = hidden_size
        self.vocab_size = input_size
        H = hidden_size
        keys = jax.random.split(key, 17)
        bound = 1.0 / jnp.sqrt(jnp.float32(H))

        # Embedding table ~ N(0, 1) like nn.Embedding default; f32 master for
        # the reference path, bf16 copy for the kernels (the gather output /
        # resident table is half-width).
        self.emb = jax.random.normal(keys[0], (input_size, H), jnp.float32)
        self.emb_bf16 = self.emb.astype(jnp.bfloat16)

        # 8 Linear layers, PyTorch-style U(-1/sqrt(fan_in), 1/sqrt(fan_in)).
        def lin(kw, kb):
            w = jax.random.uniform(kw, (H, H), jnp.float32, -bound, bound)
            b = jax.random.uniform(kb, (H,), jnp.float32, -bound, bound)
            return w, b

        wxi, bxi = lin(keys[1], keys[2]);   whi, bhi = lin(keys[3], keys[4])
        wxf, bxf = lin(keys[5], keys[6]);   whf, bhf = lin(keys[7], keys[8])
        wxo, bxo = lin(keys[9], keys[10]);  who, bho = lin(keys[11], keys[12])
        wxc, bxc = lin(keys[13], keys[14]); whc, bhc = lin(keys[15], keys[16])

        # PyTorch Linear computes x @ W.T; stack transposed weights per gate
        # (order i, f, o, c) and pre-sum the two biases (always added together).
        self.wx_f32 = jnp.concatenate([wxi.T, wxf.T, wxo.T, wxc.T], axis=1)  # (H, 4H)
        self.wh_f32 = jnp.concatenate([whi.T, whf.T, who.T, whc.T], axis=1)  # (H, 4H)
        self.b = (jnp.concatenate([bxi, bxf, bxo, bxc])
                  + jnp.concatenate([bhi, bhf, bho, bhc]))[None, :]          # (1, 4H)

        # bf16 copies for the MXU (f32 accumulation inside the kernels).
        self.wx_bf16 = self.wx_f32.astype(jnp.bfloat16)
        self.wh_bf16 = self.wh_f32.astype(jnp.bfloat16)

        # Fuse the embedding gather in-kernel (one-hot MXU gather against a
        # VMEM-resident table) for small vocabularies; otherwise fall back to
        # an XLA gather of the bf16 table with x streamed into the kernel.
        self.fuse_gather = input_size <= _FUSE_GATHER_MAX_VOCAB

    def get_initial_hidden_state(self):
        return jnp.zeros((1, 1, self.hidden_size), jnp.float32)

    def __call__(self, tokens, hidden):
        """tokens: (B, T) int; hidden = (h, c), each broadcastable to (B, T, H).

        Returns (h_t, (h_t, c_t)); h_t is bfloat16 (it feeds matmuls in the
        next step / decoder), c_t stays float32 (cell-state precision)."""
        B, T = tokens.shape
        H = self.hidden_size
        M = B * T
        h_prev, c_prev = hidden

        ids = tokens.reshape(M, 1).astype(jnp.int32)

        if h_prev.size == H and c_prev.size == H:
            # Broadcast (1,1,H) state: fold h0 @ Wh into the bias once, keep c0
            # as a single resident VMEM row -> no (M,H) h/c HBM traffic and no
            # per-row h matmul.
            b_eff = self.b + h_prev.reshape(1, H).astype(jnp.float32) @ self.wh_f32
            c0 = c_prev.reshape(1, H).astype(jnp.float32)
            if self.fuse_gather:
                h_t, c_t = _run_lstm(_lstm_bcast_ids_kernel, [ids],
                                     [self.emb_bf16, self.wx_bf16, b_eff, c0], M, H)
            else:
                x = jnp.take(self.emb_bf16, tokens.reshape(M), axis=0)   # (M, H) bf16
                h_t, c_t = _run_lstm(_lstm_bcast_x_kernel, [x],
                                     [self.wx_bf16, b_eff, c0], M, H)
        else:
            h2 = jnp.broadcast_to(h_prev, (B, T, H)).reshape(M, H).astype(jnp.bfloat16)
            c2 = jnp.broadcast_to(c_prev, (B, T, H)).reshape(M, H).astype(jnp.float32)
            if self.fuse_gather:
                h_t, c_t = _run_lstm(_lstm_full_ids_kernel, [ids, h2, c2],
                                     [self.emb_bf16, self.wx_bf16, self.wh_bf16,
                                      self.b], M, H)
            else:
                x = jnp.take(self.emb_bf16, tokens.reshape(M), axis=0)
                h_t, c_t = _run_lstm(_lstm_full_x_kernel, [x, h2, c2],
                                     [self.wx_bf16, self.wh_bf16, self.b], M, H)

        h_t = h_t.reshape(B, T, H)
        c_t = c_t.reshape(B, T, H)
        return h_t, (h_t, c_t)


# ---------------------------------------------------------------------------
# Pure-JAX f32 reference (PyTorch math) for correctness checks
# ---------------------------------------------------------------------------
def _reference_forward(enc, tokens, hidden):
    h_prev, c_prev = hidden
    B, T = tokens.shape
    H = enc.hidden_size
    x = jnp.take(enc.emb, tokens, axis=0)                     # (B, T, H)
    h_b = jnp.broadcast_to(h_prev, (B, T, H))
    c_b = jnp.broadcast_to(c_prev, (B, T, H))
    gates = x @ enc.wx_f32 + h_b @ enc.wh_f32 + enc.b         # (B, T, 4H)
    i_t = jax.nn.sigmoid(gates[..., 0 * H:1 * H])
    f_t = jax.nn.sigmoid(gates[..., 1 * H:2 * H])
    o_t = jax.nn.sigmoid(gates[..., 2 * H:3 * H])
    g_t = jnp.tanh(gates[..., 3 * H:4 * H])
    c_t = f_t * c_b + i_t * g_t
    h_t = o_t * jnp.tanh(c_t)
    return h_t, (h_t, c_t)


if __name__ == "__main__":
    key = jax.random.PRNGKey(0)
    k_params, k_tok, k_h, k_c = jax.random.split(key, 4)

    vocab = 16
    hidden = 32
    B, T = 2, 8

    enc = SeqEncoderPallas(vocab, hidden, k_params)
    tokens = jax.random.randint(k_tok, (B, T), 0, vocab, dtype=jnp.int32)

    h0 = enc.get_initial_hidden_state()
    c0 = jnp.zeros((1, 1, hidden), jnp.float32)

    # Path 1: broadcast (1,1,H) hidden state, fused in-kernel embedding gather.
    out, (h_t, c_t) = enc(tokens, (h0, c0))
    jax.block_until_ready((out, h_t, c_t))
    ref_out, (ref_h, ref_c) = _reference_forward(enc, tokens, (h0, c0))
    assert out.shape == (B, T, hidden)
    # bf16 table / matmul operands / h output (f32 accumulation) vs f32 reference.
    err1 = float(jnp.max(jnp.abs(out.astype(jnp.float32) - ref_out)))
    assert jnp.allclose(out.astype(jnp.float32), ref_out, atol=2e-2), err1
    assert jnp.allclose(c_t, ref_c, atol=2e-2)

    # Path 2: general per-row hidden state, fused gather, two-dot gate matmul.
    h_r = 0.1 * jax.random.normal(k_h, (B, T, hidden), jnp.float32)
    c_r = 0.1 * jax.random.normal(k_c, (B, T, hidden), jnp.float32)
    out2, (h2, c2) = enc(tokens, (h_r, c_r))
    jax.block_until_ready((out2, h2, c2))
    ref2, (_, rc2) = _reference_forward(enc, tokens, (h_r, c_r))
    err2 = float(jnp.max(jnp.abs(out2.astype(jnp.float32) - ref2)))
    assert jnp.allclose(out2.astype(jnp.float32), ref2, atol=2e-2), err2
    assert jnp.allclose(c2, rc2, atol=2e-2)

    # Paths 3/4: large-vocab fallback (XLA gather of the bf16 table, x streamed).
    enc.fuse_gather = False
    out3, (h3, c3) = enc(tokens, (h0, c0))
    out4, (h4, c4) = enc(tokens, (h_r, c_r))
    jax.block_until_ready((out3, c3, out4, c4))
    assert jnp.allclose(out3.astype(jnp.float32), ref_out, atol=2e-2)
    assert jnp.allclose(c3, ref_c, atol=2e-2)
    assert jnp.allclose(out4.astype(jnp.float32), ref2, atol=2e-2)
    assert jnp.allclose(c4, rc2, atol=2e-2)

    print("KERNEL_OK")
</pallas_src>

<mosaic_0001>
module attributes {stable_mosaic.version = 11 : i64} {
  func.func @_lstm_bcast_ids_kernel(%arg0: i32, %arg1: memref<16x1xi32, #tpu.memory_space<vmem>>, %arg2: memref<16x32xbf16, #tpu.memory_space<vmem>>, %arg3: memref<32x128xbf16, #tpu.memory_space<vmem>>, %arg4: memref<1x128xf32, #tpu.memory_space<vmem>>, %arg5: memref<1x32xf32, #tpu.memory_space<vmem>>, %arg6: memref<16x32xbf16, #tpu.memory_space<vmem>>, %arg7: memref<16x32xf32, #tpu.memory_space<vmem>>) attributes {dimension_semantics = [#tpu.dimension_semantics<parallel>], iteration_bounds = array<i64: 1>, scalar_prefetch = 0 : i64, scratch_operands = 0 : i64, tpu.core_type = #tpu.core_type<tc>, window_params = [{transform_indices = @transform_0, window_bounds = array<i64: 16, 1>}, {pipeline_mode = #tpu.pipeline_mode<synchronous>, transform_indices = @transform_1, window_bounds = array<i64: 16, 32>}, {pipeline_mode = #tpu.pipeline_mode<synchronous>, transform_indices = @transform_2, window_bounds = array<i64: 32, 128>}, {pipeline_mode = #tpu.pipeline_mode<synchronous>, transform_indices = @transform_3, window_bounds = array<i64: 1, 128>}, {pipeline_mode = #tpu.pipeline_mode<synchronous>, transform_indices = @transform_4, window_bounds = array<i64: 1, 32>}, {transform_indices = @transform_5, window_bounds = array<i64: 16, 32>}, {transform_indices = @transform_6, window_bounds = array<i64: 16, 32>}]} {
    %c0 = arith.constant 0 : index
    %c0_0 = arith.constant 0 : index
    %0 = vector.load %arg1[%c0, %c0_0] : memref<16x1xi32, #tpu.memory_space<vmem>>, vector<16x1xi32>
    %1 = tpu.iota {dimensions = array<i32: 1>} : vector<16x16xi32>
    %2 = vector.broadcast %0 : vector<16x1xi32> to vector<16x16xi32>
    %3 = arith.cmpi eq, %2, %1 : vector<16x16xi32>
    %4 = arith.extui %3 : vector<16x16xi1> to vector<16x16xi32>
    %5 = arith.sitofp %4 : vector<16x16xi32> to vector<16x16xf32>
    %6 = arith.truncf %5 : vector<16x16xf32> to vector<16x16xbf16>
    %c0_1 = arith.constant 0 : index
    %c0_2 = arith.constant 0 : index
    %7 = vector.load %arg2[%c0_1, %c0_2] : memref<16x32xbf16, #tpu.memory_space<vmem>>, vector<16x32xbf16>
    %cst = arith.constant dense<0.000000e+00> : vector<16x32xf32>
    %8 = tpu.matmul %6, %7, %cst {dimension_numbers = #tpu.dot_dimension_numbers<[1], [0], [0], [1], [0, 0, 1, 1], [], []>} : vector<16x16xbf16>, vector<16x32xbf16>, vector<16x32xf32> -> vector<16x32xf32>
    %9 = arith.truncf %8 : vector<16x32xf32> to vector<16x32xbf16>
    %c0_3 = arith.constant 0 : index
    %c0_4 = arith.constant 0 : index
    %10 = vector.load %arg3[%c0_3, %c0_4] : memref<32x128xbf16, #tpu.memory_space<vmem>>, vector<32x128xbf16>
    %cst_5 = arith.constant dense<0.000000e+00> : vector<16x128xf32>
    %11 = tpu.matmul %9, %10, %cst_5 {dimension_numbers = #tpu.dot_dimension_numbers<[1], [0], [0], [1], [0, 0, 1, 1], [], []>} : vector<16x32xbf16>, vector<32x128xbf16>, vector<16x128xf32> -> vector<16x128xf32>
    %c0_6 = arith.constant 0 : index
    %c0_7 = arith.constant 0 : index
    %12 = vector.load %arg4[%c0_6, %c0_7] : memref<1x128xf32, #tpu.memory_space<vmem>>, vector<1x128xf32>
    %13 = vector.broadcast %12 : vector<1x128xf32> to vector<16x128xf32>
    %14 = arith.addf %11, %13 : vector<16x128xf32>
    %c0_8 = arith.constant 0 : index
    %c0_9 = arith.constant 0 : index
    %15 = vector.load %arg5[%c0_8, %c0_9] : memref<1x32xf32, #tpu.memory_space<vmem>>, vector<1x32xf32>
    %16 = vector.extract_strided_slice %14 {offsets = [0, 0], sizes = [16, 96], strides = [1, 1]} : vector<16x128xf32> to vector<16x96xf32>
    %17 = arith.negf %16 : vector<16x96xf32>
    %18 = math.exp %17 : vector<16x96xf32>
    %cst_10 = arith.constant 1.000000e+00 : f32
    %19 = vector.broadcast %cst_10 : f32 to vector<16x96xf32>
    %20 = arith.addf %19, %18 : vector<16x96xf32>
    %21 = arith.divf %19, %20 : vector<16x96xf32>
    %22 = vector.extract_strided_slice %21 {offsets = [0, 0], sizes = [16, 32], strides = [1, 1]} : vector<16x96xf32> to vector<16x32xf32>
    %23 = vector.extract_strided_slice %21 {offsets = [0, 32], sizes = [16, 32], strides = [1, 1]} : vector<16x96xf32> to vector<16x32xf32>
    %24 = vector.extract_strided_slice %21 {offsets = [0, 64], sizes = [16, 32], strides = [1, 1]} : vector<16x96xf32> to vector<16x32xf32>
    %25 = vector.extract_strided_slice %14 {offsets = [0, 96], sizes = [16, 32], strides = [1, 1]} : vector<16x128xf32> to vector<16x32xf32>
    %26 = math.tanh %25 : vector<16x32xf32>
    %27 = vector.broadcast %15 : vector<1x32xf32> to vector<16x32xf32>
    %28 = arith.mulf %23, %27 : vector<16x32xf32>
    %29 = arith.mulf %22, %26 : vector<16x32xf32>
    %30 = arith.addf %28, %29 : vector<16x32xf32>
    %31 = math.tanh %30 : vector<16x32xf32>
    %32 = arith.mulf %24, %31 : vector<16x32xf32>
    %33 = arith.truncf %32 : vector<16x32xf32> to vector<16x32xbf16>
    %c0_11 = arith.constant 0 : index
    %c0_12 = arith.constant 0 : index
    %34 = vector.load %arg6[%c0_11, %c0_12] : memref<16x32xbf16, #tpu.memory_space<vmem>>, vector<16x32xbf16>
    tpu.vector_store %arg6[%c0_11, %c0_12], %33 {strides = array<i32>} : memref<16x32xbf16, #tpu.memory_space<vmem>>, vector<16x32xbf16>,
    %c0_13 = arith.constant 0 : index
    %c0_14 = arith.constant 0 : index
    %35 = vector.load %arg7[%c0_13, %c0_14] : memref<16x32xf32, #tpu.memory_space<vmem>>, vector<16x32xf32>
    tpu.vector_store %arg7[%c0_13, %c0_14], %30 {strides = array<i32>} : memref<16x32xf32, #tpu.memory_space<vmem>>, vector<16x32xf32>,
    return
  }
  func.func @transform_0(%arg0: i32) -> (i32, i32) {
    %c0_i32 = arith.constant 0 : i32
    %c0_i32_0 = arith.constant 0 : i32
    return %arg0, %c0_i32 : i32, i32
  }
  func.func @transform_1(%arg0: i32) -> (i32, i32) {
    %c0_i32 = arith.constant 0 : i32
    %c0_i32_0 = arith.constant 0 : i32
    %c0_i32_1 = arith.constant 0 : i32
    return %c0_i32, %c0_i32_0 : i32, i32
  }
  func.func @transform_2(%arg0: i32) -> (i32, i32) {
    %c0_i32 = arith.constant 0 : i32
    %c0_i32_0 = arith.constant 0 : i32
    %c0_i32_1 = arith.constant 0 : i32
    return %c0_i32, %c0_i32_0 : i32, i32
  }
  func.func @transform_3(%arg0: i32) -> (i32, i32) {
    %c0_i32 = arith.constant 0 : i32
    %c0_i32_0 = arith.constant 0 : i32
    %c0_i32_1 = arith.constant 0 : i32
    return %c0_i32, %c0_i32_0 : i32, i32
  }
  func.func @transform_4(%arg0: i32) -> (i32, i32) {
    %c0_i32 = arith.constant 0 : i32
    %c0_i32_0 = arith.constant 0 : i32
    %c0_i32_1 = arith.constant 0 : i32
    return %c0_i32, %c0_i32_0 : i32, i32
  }
  func.func @transform_5(%arg0: i32) -> (i32, i32) {
    %c0_i32 = arith.constant 0 : i32
    %c0_i32_0 = arith.constant 0 : i32
    return %arg0, %c0_i32 : i32, i32
  }
  func.func @transform_6(%arg0: i32) -> (i32, i32) {
    %c0_i32 = arith.constant 0 : i32
    %c0_i32_0 = arith.constant 0 : i32
    return %arg0, %c0_i32 : i32, i32
  }
}

</mosaic_0001>

<bundles_post_ra>
// kernel: tpu_custom_call.1
= control target key start
LH: loop header
LB: loop body
LE: loop exit
PB: predicated region body
PF: predicated region fallthrough
CT: control target
= control target key end

     0   :  { %12 = vsyncpa [#allocation3], 0  ;;  %v391_v1 = vmov 0   ;;  %v392_v2 = vmov 0.0   ;;  %s503_s0 = inlined_call_operand.vmem [shape: s32[16,1], index: 0, kind: input, shape index: {}]   ;;  %s504_s1 = inlined_call_operand.vmem [shape: bf16[16,32], index: 1, kind: input, shape index: {}]   ;;  %s505_s2 = inlined_call_operand.vmem [shape: bf16[32,128], index: 2, kind: input, shape index: {}]   ;;  %s506_s3 = inlined_call_operand.vmem [shape: f32[1,128], index: 3, kind: input, shape index: {}]   ;;  %s507_s4 = inlined_call_operand.vmem [shape: f32[1,32], index: 4, kind: input, shape index: {}]   ;;  %s508_s5 = inlined_call_operand.hbm [shape: bf16[16,32], index: 5, kind: output, shape index: {0}]   ;;  %s509_s6 = inlined_call_operand.hbm [shape: f32[16,32], index: 6, kind: output, shape index: {1}]  }
   0x1   :  { %v25_v0 = vld [vmem:[%s503_s0] sm:$0xff]  ;;  %323 = vset.pattern.permute.xlu0 %v391_v1  ;;  %298 = vmatprep.subr.bf16.mxu0 %v392_v2  ;;  %v26_v3 = vld [vmem:[%s503_s0 + $0x8] sm:$0xff] }
   0x2   :  { %30 = vperm.xlu0 %323, %v25_v0   ;;  %304 = vmatprep.subr.bf16.mxu1 %v392_v2 }
   0x3   :  { %13 = vsyncpa [#allocation5], 0  ;;  %v324_v4 = vld [vmem:[%s504_s1] sm:$0xff]   ;;  %vm393_vm0 = vmmov 0   ;;  %v27_v6 = vlaneseq  ;;  %vm50_vm3 = vcmask 130048   ;;  %v326_v13 = vld [vmem:[%s505_s2 + $0x8] sm:$0xff]  }
   0x4   :  { %299 = vmatpush3.bf16.msra.mxu0 %v324_v4  ;;  %300 = vmatprep.mubr.msk.bf16.mxu0 %vm393_vm0, %v392_v2  ;;  %v325_v5 = vld [vmem:[%s505_s2] sm:$0xff]   ;;  %s394_s7 = smov 32   ;;  %vm119_vm4 = vcmask 261120   ;;  %s395_s2 = smov 64   ;;  %vm233_vm5 = vcmask 257024  }
   0x5   :  { %308 = vmatprep.mubr.msk.bf16.mxu1 %vm393_vm0, %v392_v2  ;;  %305 = vmatpush3.bf16.msra.mxu1 %v325_v5  ;;  %v28_v7 = vand.u32 127, %v27_v6  ;;  %v288_v14 = vld [vmem:[%s507_s4] ss:$0 sm:$0xff]  ;;  %s397_s4 = smov [#allocation2]   ;;  %s398_s11 = smov [#allocation4]  }
   0x6   :  { %33 = vperm.xlu0 %323, %v26_v3   ;;  %306 = vmatprep.subr.bf16.mxu1 %v392_v2  ;;  %v282_v20 = vld [vmem:[%s506_s3] ss:$0 sm:$0xff]  ;;  %s396_s3 = smov 96   ;;  %s251_s10 = sshll.u32 %s397_s4, 4  ;;  %s252_s10 = int_to_ptr.vmem [resolvable:$true] %s251_s10 }
   0x7   :  { %s263_s12 = sshll.u32 %s398_s11, 4  ;;  %s343_s13 = scalar_lea.vmem %s252_s10, 128  ;;  %s469_s12 = int_to_ptr.vmem [resolvable:$true] %s263_s12 }
   0x8   :  { %p344_p0 = scmp.ne.s32.totalorder %s252_s10, %s343_s13  ;;  %p348_p1 = scmp.lt.s32.totalorder %s252_s10, %s252_s10 }
   0x9   :  { %307 = vmatpush3.bf16.msra.mxu1 %v326_v13  ;;  %p349_p2 = scmp.lt.s32.totalorder %s343_s13, %s343_s13 }
   0xa   :  { %184 = vrot.lane.b32.xlu0 %v288_v14, %s394_s7 }
   0xb   :  { %p350_p3 = por %p349_p2, %p348_p1 }
   0xd   :  { %p351_p4 = pnand %p350_p3, %p344_p0 }
  0x81   :  { %v31_v8 = vpop.permute.xlu0 %30 }
  0x82   :  { %vm35_vm1 = vcmp.eq.s32.totalorder %v31_v8, %v28_v7 }
  0x83   :  { %v278_v10 = vsel %vm35_vm1, 1.0, %v392_v2 }
  0x85   :  { %v34_v9 = vpop.permute.xlu0 %33 }
  0x86   :  { %vm36_vm2 = vcmp.eq.s32.totalorder %v34_v9, %v28_v7 }
  0x87   :  { %v279_v11 = vsel %vm36_vm2, 1.0, %v392_v2 }
  0x88   :  { %v41_v12 = vpack.c.bf16 %v279_v11, %v278_v10 }
  0x89   :  { %v185_v41 = vpop.permute.xlu0 %184 }
  0x8a   :  { %301 = vmatmul.mubr.msk.bf16.vlgmr.msra.gmra.mrb[0].mxu0 %vm50_vm3, %v41_v12 }
 0x15d   :  { %v88_v15 = vpop.f32.mrb[0].mxu0 }
 0x15e   :  { %v302_v16 = vpop.f32.mrb[1].mxu0 }
 0x15f   :  { %v91_v17 = vpop.f32.mrb[2].mxu0 }
 0x160   :  { %v95_v18 = vpack.c.bf16 %v91_v17, %v88_v15  ;;  %v303_v19 = vpop.f32.mrb[3].mxu0 }
 0x162   :  { %309 = vmatmul.mubr.msk.bf16.vlgmr.msra.gmra.mrb[0].mxu1 %vm119_vm4, %v95_v18 }
 0x235   :  { %v157_v21 = vpop.f32.mrb[0].mxu1 }
 0x236   :  { %v158_v22 = vadd.f32 %v282_v20, %v157_v21  ;;  %v310_v23 = vpop.f32.mrb[1].mxu1 }
 0x237   :  { %v160_v24 = vpop.f32.mrb[2].mxu1 }
 0x238   :  { %327 = vtanh.f32 %v158_v22  ;;  %v161_v25 = vadd.f32 %v282_v20, %v160_v24  ;;  %v311_v26 = vpop.f32.mrb[3].mxu1  ;;  %v286_v29 = vmul.f32 -1.442695, %v158_v22 }
 0x23a   :  { %329 = vtanh.f32 %v161_v25  ;;  %v287_v30 = vmul.f32 -1.442695, %v161_v25 }
 0x23b   :  { %331 = vpow2.f32 %v286_v29 }
 0x23c   :  { %333 = vpow2.f32 %v287_v30 }
 0x242   :  { %v328_v27 = vpop.eup %327 }
 0x243   :  { %191 = vrot.lane.b32.xlu1 %v328_v27, %s394_s7 }
 0x244   :  { %v330_v28 = vpop.eup %329 }
 0x245   :  { %v332_v31 = vpop.eup %331 }
 0x246   :  { %v171_v32 = vadd.f32 1.0, %v332_v31  ;;  %v334_v33 = vpop.eup %333 }
 0x247   :  { %193 = vrot.lane.b32.xlu1 %v330_v28, %s394_s7  ;;  %v172_v34 = vadd.f32 1.0, %v334_v33 }
 0x248   :  { %335 = vrcp.f32 %v171_v32 }
 0x249   :  { %337 = vrcp.f32 %v172_v34 }
 0x252   :  { %v336_v35 = vpop.eup %335 }
 0x253   :  { %v338_v38 = vpop.eup %337  ;;  %v187_v42 = vmul.f32 %v336_v35, %v185_v41 }
 0x254   :  { %v188_v45 = vmul.f32 %v338_v38, %v185_v41 }
 0x2b5   :  { %v192_v36 = vpop.permute.xlu1 %191 }
 0x2b6   :  { %v197_v37 = vmul.f32 %v336_v35, %v192_v36 }
 0x2b8   :  { %201 = vrot.lane.b32.xlu1 %v197_v37, %s394_s7 }
 0x2b9   :  { %v194_v39 = vpop.permute.xlu1 %193 }
 0x2ba   :  { %v198_v40 = vmul.f32 %v338_v38, %v194_v39 }
 0x2bc   :  { %203 = vrot.lane.b32.xlu0 %v198_v40, %s394_s7 }
 0x32a   :  { %v202_v43 = vpop.permute.xlu1 %201 }
 0x32b   :  { %v207_v44 = vadd.f32 %v202_v43, %v187_v42 }
 0x32d   :  { %339 = vtanh.f32 %v207_v44 }
 0x32e   :  { %v204_v46 = vpop.permute.xlu0 %203 }
 0x32f   :  { %v208_v47 = vadd.f32 %v204_v46, %v188_v45 }
 0x331   :  { %341 = vtanh.f32 %v208_v47 }
 0x337   :  { %v340_v48 = vpop.eup %339 }
 0x338   :  { %213 = vrot.lane.b32.xlu1 %v340_v48, %s394_s7 }
 0x33b   :  { %v342_v49 = vpop.eup %341 }
 0x33c   :  { %215 = vrot.lane.b32.xlu0 %v342_v49, %s394_s7 }
 0x3aa   :  { %v214_v50 = vpop.permute.xlu1 %213 }
 0x3ab   :  { %v219_v51 = vmul.f32 %v336_v35, %v214_v50 }
 0x3ad   :  { %v291_v52 = vpack.c.bf16 %v219_v51, %v219_v51 }
 0x3ae   :  { %v216_v53 = vpop.permute.xlu0 %215 }
 0x3af   :  { %v220_v54 = vmul.f32 %v338_v38, %v216_v53  ;;  %227 = vrot.lane.b32.xlu1 %v291_v52, %s395_s2 }
 0x3b1   :  { %v292_v55 = vpack.c.bf16 %v220_v54, %v220_v54 }
 0x3b3   :  { %238 = vrot.lane.b32.xlu1 %v207_v44, %s396_s3  ;;  %229 = vrot.lane.b32.xlu0 %v292_v55, %s395_s2 }
 0x3b7   :  { %240 = vrot.lane.b32.xlu0 %v208_v47, %s396_s3 }
 0x421   :  { %v228_v56 = vpop.permute.xlu1 %227 }
 0x422   :  { %234 = vst.msk [vmem:[#allocation2] sm:$0xf] %vm233_vm5, %v228_v56 }
 0x425   :  { %v239_v57 = vpop.permute.xlu1 %238  ;;  %v230_v58 = vpop.permute.xlu0 %229 }
 0x426   :  { %244 = vst.msk [vmem:[#allocation4] sm:$0xff] %vm119_vm4, %v239_v57 }
 0x427   :  { %235 = vst.msk [vmem:[#allocation2 + $0x4] sm:$0xf] %vm233_vm5, %v230_v58 }
 0x428   :  { %354 = shalt.err (!%p351_p4)
}
 0x429   :  { %s355_s16 = scalar_lea.hbm %s508_s5, 128 }
 0x42a   :  { %p356_p5 = scmp.ne.s32.totalorder %s508_s5, %s355_s16  ;;  %p359_p6 = scmp.lt.u32.totalorder %s355_s16, %s508_s5 }
 0x42c   :  { %p361_p7 = pnand %p359_p6, %p356_p5 }
 0x42e   :  { %364 = shalt.err (!%p361_p7)
}
 0x42f   :  { %s399_s21 = smov 4   ;;  %v241_v59 = vpop.permute.xlu0 %240  ;;  %s365_s24 = scalar_lea.vmem %s469_s12, 256 }
 0x430   :  { %257 = dma.vmem_to_hbm [thread:$0]  %s252_s10, 128, %s508_s5, [#allocation3], %s395_s2, %s395_s2, %s399_s21   ;;  %245 = vst.msk [vmem:[#allocation4 + $0x8] sm:$0xff] %vm119_vm4, %v241_v59 }
 0x431   :  { %p366_p8 = scmp.ne.s32.totalorder %s469_s12, %s365_s24  ;;  %p370_p9 = scmp.lt.s32.totalorder %s469_s12, %s469_s12 }
 0x432   :  { %p371_p10 = scmp.lt.s32.totalorder %s365_s24, %s365_s24 }
 0x434   :  { %p372_p11 = por %p371_p10, %p370_p9 }
 0x436   :  { %p373_p12 = pnand %p372_p11, %p366_p8 }
 0x438   :  { %376 = shalt.err (!%p373_p12)
}
 0x439   :  { %s377_s27 = scalar_lea.hbm %s509_s6, 256 }
 0x43a   :  { %p378_p13 = scmp.ne.s32.totalorder %s509_s6, %s377_s27  ;;  %p381_p0 = scmp.lt.u32.totalorder %s377_s27, %s509_s6 }
 0x43c   :  { %p383_p1 = pnand %p381_p0, %p378_p13 }
 0x43e   :  { %386 = shalt.err (!%p383_p1)
}
 0x43f   :  { %s400_s29 = smov 128   ;;  %s401_s30 = smov 8  }
 0x440   :  { %269 = dma.vmem_to_hbm [thread:$0]  %s469_s12, 256, %s509_s6, [#allocation5], %s400_s29, %s400_s29, %s401_s30  }
 0x441   :  { %387 = dma.done.wait [#allocation3], 128  }
 0x442   :  { %388 = vsyncadd [#allocation3], 4294967168 }
 0x443   :  { %389 = dma.done.wait [#allocation5], 256  }
 0x444   :  { %390 = vsyncadd [#allocation5], 4294967040 }
 0x445   :  { %276 = vsyncpa [#allocation3], 1 }
 0x446   :  { %277 = vsyncpa [#allocation5], 1 }

</bundles_post_ra>
